<compile_context>
chip_gen: v6e
topology: v6e:2x2x1
jax: 0.10.0
libtpu: 0.0.40
codegen_flags: <defaults>
</compile_context>

<pallas_src>
import math
import jax
import jax.numpy as jnp
from jax.experimental import pallas as pl
from jax.experimental.pallas import tpu as pltpu


def _round_up(a, b):
    return ((a + b - 1) // b) * b


def _gelu_exact(x):
    # torch.nn.GELU() default = exact erf-based GELU, computed in f32.
    return 0.5 * x * (1.0 + jax.lax.erf(x * (1.0 / math.sqrt(2.0))))


# ----------------------------------------------------------------------------------
# Kernels
# ----------------------------------------------------------------------------------
def ffn_resident_kernel(x_ref, w1_ref, b1_ref, w2_ref, b2_ref, o_ref):
    """Weight-resident path.  Grid = (row_tiles,).  W1/W2/b1/b2 blocks are the full
    arrays with constant index maps -> DMA'd once, reused by every row tile."""
    x = x_ref[...].astype(jnp.bfloat16)                      # cast in-kernel (VPU, free)
    h = jnp.dot(x, w1_ref[...], preferred_element_type=jnp.float32)
    h = _gelu_exact(h + b1_ref[...])                         # bias + GELU in f32
    # TODO(synk): dropout with p > 0 (training mode) not implemented; p = 0 -> identity.
    out = jnp.dot(h.astype(jnp.bfloat16), w2_ref[...],
                  preferred_element_type=jnp.float32)
    o_ref[...] = (out + b2_ref[...]).astype(o_ref.dtype)


def ffn_streaming_kernel(x_ref, w1_ref, b1_ref, w2_ref, b2_ref, o_ref, acc_ref):
    """Hidden-streamed fallback (huge H only).  Grid = (row_tiles, hidden_tiles);
    the hidden axis is a reduction for the second matmul."""
    j = pl.program_id(1)

    @pl.when(j == 0)
    def _():
        # Accumulator starts at b2 (saves the extra (tm, D) add in finalize).
        acc_ref[...] = jnp.broadcast_to(b2_ref[...], acc_ref.shape)

    x = x_ref[...].astype(jnp.bfloat16)
    h = jnp.dot(x, w1_ref[...], preferred_element_type=jnp.float32)
    h = _gelu_exact(h + b1_ref[...])
    # TODO(synk): dropout with p > 0 (training mode) not implemented; p = 0 -> identity.
    acc_ref[...] += jnp.dot(h.astype(jnp.bfloat16), w2_ref[...],
                            preferred_element_type=jnp.float32)

    @pl.when(j == pl.num_programs(1) - 1)
    def _():
        o_ref[...] = acc_ref[...].astype(o_ref.dtype)


# ----------------------------------------------------------------------------------
# Wrapper
# ----------------------------------------------------------------------------------
def prepare_ffn_params(w1, b1, w2, b2):
    """One-time parameter preparation (hoisted out of the per-call path, per review):
    bf16 matmul operands, f32 row-vector biases."""
    return (w1.astype(jnp.bfloat16),
            b1.astype(jnp.float32).reshape(1, -1),
            w2.astype(jnp.bfloat16),
            b2.astype(jnp.float32).reshape(1, -1))


def _vmem_limit_bytes():
    """~75% of this chip's physical VMEM (v5e/v6e ~96 MB, v7x ~48 MB)."""
    cap = 64 * 1024 * 1024  # conservative default (v7x) if the query is unavailable
    try:
        cap = int(pltpu.get_tpu_info().vmem_capacity_bytes)
    except Exception:
        pass
    return int(max(32 * 1024 * 1024, min(100 * 1024 * 1024, 0.75 * cap)))


def feedforward(x, params, *, tm=512, th=512):
    """x: [B, N, D] float array.  params from prepare_ffn_params.  Returns [B, N, D]."""
    w1b, b1f, w2b, b2f = params
    B, N, D = x.shape
    H = w1b.shape[1]
    rows = B * N
    out_dtype = x.dtype
    xbytes = jnp.dtype(x.dtype).itemsize
    obytes = jnp.dtype(out_dtype).itemsize

    vmem_limit = _vmem_limit_bytes()

    # ---- row tile: 256-aligned, >= 2 tiles whenever rows > 256 (v7x megacore) ----
    if rows <= 256:
        tm_eff = _round_up(rows, 8)
    else:
        tm_eff = max(256, min(tm, _round_up(-(-rows // 2), 256)))

    # ---- weight-resident vs hidden-streamed decision ----
    # (x + out blocks double-buffered) + (full bf16 W1/W2, double-buffered by the
    # pipeline even though fetched only once) + matmul/GELU intermediates.
    def _resident_bytes(tm_):
        blocks = 2 * tm_ * D * (xbytes + obytes)
        weights = 2 * 2 * (D * H + H * D)
        inter = tm_ * H * (4 + 2) + tm_ * D * 4
        return blocks + weights + inter

    resident = _resident_bytes(tm_eff) <= int(0.8 * vmem_limit)

    if not resident and rows > 256:
        # Streaming path: weight HBM traffic scales ~1/tm, so push the row tile toward
        # the v6e roofline knee (~768 rows) when there are enough rows for >= 2 tiles.
        tm_eff = max(tm_eff, min(768, _round_up(-(-rows // 2), 256)))

    rows_p = _round_up(rows, tm_eff)
    x2 = x.reshape(rows, D)
    if rows_p > rows:
        # TODO(synk): replace the pad with a masked store on the last row tile.
        x2 = jnp.pad(x2, ((0, rows_p - rows), (0, 0)))
    n_row = rows_p // tm_eff

    if resident:
        cost = pl.CostEstimate(
            flops=4 * rows_p * D * H,
            transcendentals=rows_p * H,
            bytes_accessed=(rows_p * D * xbytes            # x, read once
                            + 2 * (D * H + H * D)          # bf16 W1 + W2, once
                            + 4 * (H + D)                  # biases
                            + rows_p * D * obytes),        # output, once
        )
        out = pl.pallas_call(
            ffn_resident_kernel,
            out_shape=jax.ShapeDtypeStruct((rows_p, D), out_dtype),
            grid_spec=pltpu.PrefetchScalarGridSpec(
                num_scalar_prefetch=0,
                grid=(n_row,),
                in_specs=[
                    pl.BlockSpec((tm_eff, D), lambda i: (i, 0)),   # x rows
                    pl.BlockSpec((D, H), lambda i: (0, 0)),        # W1 (resident)
                    pl.BlockSpec((1, H), lambda i: (0, 0)),        # b1 (resident)
                    pl.BlockSpec((H, D), lambda i: (0, 0)),        # W2 (resident)
                    pl.BlockSpec((1, D), lambda i: (0, 0)),        # b2 (resident)
                ],
                out_specs=pl.BlockSpec((tm_eff, D), lambda i: (i, 0)),
            ),
            compiler_params=pltpu.CompilerParams(
                dimension_semantics=("parallel",),
                vmem_limit_bytes=vmem_limit,
            ),
            cost_estimate=cost,
        )(x2, w1b, b1f, w2b, b2f)
    else:
        # Hidden-dim tiling; zero-padded GELU columns hit zero W2 rows -> no contribution.
        th_eff = th
        H_p = _round_up(H, th_eff)
        if H_p > H:
            w1p = jnp.pad(w1b, ((0, 0), (0, H_p - H)))
            b1p = jnp.pad(b1f, ((0, 0), (0, H_p - H)))
            w2p = jnp.pad(w2b, ((0, H_p - H), (0, 0)))
        else:
            w1p, b1p, w2p = w1b, b1f, w2b
        n_hid = H_p // th_eff
        cost = pl.CostEstimate(
            flops=4 * rows_p * D * H_p,
            transcendentals=rows_p * H_p,
            bytes_accessed=(rows_p * D * xbytes
                            + n_row * 2 * (D * H_p + H_p * D)  # weights re-streamed per row tile
                            + 4 * (H_p + D)
                            + rows_p * D * obytes),
        )
        out = pl.pallas_call(
            ffn_streaming_kernel,
            out_shape=jax.ShapeDtypeStruct((rows_p, D), out_dtype),
            grid_spec=pltpu.PrefetchScalarGridSpec(
                num_scalar_prefetch=0,
                grid=(n_row, n_hid),
                in_specs=[
                    pl.BlockSpec((tm_eff, D), lambda i, j: (i, 0)),   # x rows (reused over j)
                    pl.BlockSpec((D, th_eff), lambda i, j: (0, j)),   # W1 hidden slab
                    pl.BlockSpec((1, th_eff), lambda i, j: (0, j)),   # b1 hidden slab
                    pl.BlockSpec((th_eff, D), lambda i, j: (j, 0)),   # W2 hidden slab
                    pl.BlockSpec((1, D), lambda i, j: (0, 0)),        # b2
                ],
                out_specs=pl.BlockSpec((tm_eff, D), lambda i, j: (i, 0)),
                scratch_shapes=[pltpu.VMEM((tm_eff, D), jnp.float32)],
            ),
            compiler_params=pltpu.CompilerParams(
                dimension_semantics=("parallel", "arbitrary"),
                vmem_limit_bytes=vmem_limit,
            ),
            cost_estimate=cost,
        )(x2, w1p, b1p, w2p, b2f)

    if rows_p > rows:
        out = out[:rows]
    return out.reshape(B, N, D)


def feedforward_ref(x, w1, b1, w2, b2):
    h = x @ w1 + b1
    h = 0.5 * h * (1.0 + jax.lax.erf(h / math.sqrt(2.0)))
    return h @ w2 + b2


if __name__ == "__main__":
    # Lane-friendly feature dims (D multiple of 128); odd token count exercises the
    # row-padding path; weights small enough to take the weight-resident path.
    B, N, D, HID = 2, 7, 128, 256

    key = jax.random.PRNGKey(0)
    kx, kw1, kb1, kw2, kb2 = jax.random.split(key, 5)

    x = jax.random.normal(kx, (B, N, D), dtype=jnp.float32)

    # Deterministic init mimicking nn.Linear (uniform in +-1/sqrt(fan_in)).
    # Weights stored transposed relative to torch ([in, out] so the kernel does x @ w).
    lim1 = 1.0 / math.sqrt(D)
    lim2 = 1.0 / math.sqrt(HID)
    w1 = jax.random.uniform(kw1, (D, HID), jnp.float32, -lim1, lim1)
    b1 = jax.random.uniform(kb1, (HID,), jnp.float32, -lim1, lim1)
    w2 = jax.random.uniform(kw2, (HID, D), jnp.float32, -lim2, lim2)
    b2 = jax.random.uniform(kb2, (D,), jnp.float32, -lim2, lim2)

    params = prepare_ffn_params(w1, b1, w2, b2)   # one-time prep, hoisted out of the call
    out = feedforward(x, params)
    out = jax.block_until_ready(out)

    ref = feedforward_ref(x.reshape(-1, D), w1, b1, w2, b2).reshape(B, N, D)
    assert out.shape == (B, N, D)
    max_err = float(jnp.max(jnp.abs(out - ref)))
    # bf16 matmul inputs with f32 accumulation -> tolerance loosened accordingly.
    assert jnp.allclose(out, ref, atol=3e-2, rtol=3e-2), f"mismatch vs reference (max abs err {max_err})"

    print("KERNEL_OK")
</pallas_src>

<mosaic_0001>
module attributes {stable_mosaic.version = 11 : i64} {
  func.func @ffn_resident_kernel(%arg0: i32, %arg1: memref<16x128xf32, #tpu.memory_space<vmem>>, %arg2: memref<128x256xbf16, #tpu.memory_space<vmem>>, %arg3: memref<1x256xf32, #tpu.memory_space<vmem>>, %arg4: memref<256x128xbf16, #tpu.memory_space<vmem>>, %arg5: memref<1x128xf32, #tpu.memory_space<vmem>>, %arg6: memref<16x128xf32, #tpu.memory_space<vmem>>) attributes {dimension_semantics = [#tpu.dimension_semantics<parallel>], iteration_bounds = array<i64: 1>, scalar_prefetch = 0 : i64, scratch_operands = 0 : i64, tpu.core_type = #tpu.core_type<tc>, window_params = [{transform_indices = @transform_0, window_bounds = array<i64: 16, 128>}, {pipeline_mode = #tpu.pipeline_mode<synchronous>, transform_indices = @transform_1, window_bounds = array<i64: 128, 256>}, {pipeline_mode = #tpu.pipeline_mode<synchronous>, transform_indices = @transform_2, window_bounds = array<i64: 1, 256>}, {pipeline_mode = #tpu.pipeline_mode<synchronous>, transform_indices = @transform_3, window_bounds = array<i64: 256, 128>}, {pipeline_mode = #tpu.pipeline_mode<synchronous>, transform_indices = @transform_4, window_bounds = array<i64: 1, 128>}, {transform_indices = @transform_5, window_bounds = array<i64: 16, 128>}]} {
    %c0 = arith.constant 0 : index
    %c0_0 = arith.constant 0 : index
    %0 = vector.load %arg1[%c0, %c0_0] : memref<16x128xf32, #tpu.memory_space<vmem>>, vector<16x128xf32>
    %1 = arith.truncf %0 : vector<16x128xf32> to vector<16x128xbf16>
    %c0_1 = arith.constant 0 : index
    %c0_2 = arith.constant 0 : index
    %2 = vector.load %arg2[%c0_1, %c0_2] : memref<128x256xbf16, #tpu.memory_space<vmem>>, vector<128x256xbf16>
    %cst = arith.constant dense<0.000000e+00> : vector<16x256xf32>
    %3 = tpu.matmul %1, %2, %cst {dimension_numbers = #tpu.dot_dimension_numbers<[1], [0], [0], [1], [0, 0, 1, 1], [], []>} : vector<16x128xbf16>, vector<128x256xbf16>, vector<16x256xf32> -> vector<16x256xf32>
    %c0_3 = arith.constant 0 : index
    %c0_4 = arith.constant 0 : index
    %4 = vector.load %arg3[%c0_3, %c0_4] : memref<1x256xf32, #tpu.memory_space<vmem>>, vector<1x256xf32>
    %5 = vector.broadcast %4 : vector<1x256xf32> to vector<16x256xf32>
    %6 = arith.addf %3, %5 : vector<16x256xf32>
    %cst_5 = arith.constant 5.000000e-01 : f32
    %7 = vector.broadcast %cst_5 : f32 to vector<16x256xf32>
    %8 = arith.mulf %7, %6 : vector<16x256xf32>
    %cst_6 = arith.constant 0.707106769 : f32
    %9 = vector.broadcast %cst_6 : f32 to vector<16x256xf32>
    %10 = arith.mulf %6, %9 : vector<16x256xf32>
    %11 = math.erf %10 : vector<16x256xf32>
    %cst_7 = arith.constant 1.000000e+00 : f32
    %12 = vector.broadcast %cst_7 : f32 to vector<16x256xf32>
    %13 = arith.addf %12, %11 : vector<16x256xf32>
    %14 = arith.mulf %8, %13 : vector<16x256xf32>
    %15 = arith.truncf %14 : vector<16x256xf32> to vector<16x256xbf16>
    %c0_8 = arith.constant 0 : index
    %c0_9 = arith.constant 0 : index
    %16 = vector.load %arg4[%c0_8, %c0_9] : memref<256x128xbf16, #tpu.memory_space<vmem>>, vector<256x128xbf16>
    %cst_10 = arith.constant dense<0.000000e+00> : vector<16x128xf32>
    %17 = tpu.matmul %15, %16, %cst_10 {dimension_numbers = #tpu.dot_dimension_numbers<[1], [0], [0], [1], [0, 0, 1, 1], [], []>} : vector<16x256xbf16>, vector<256x128xbf16>, vector<16x128xf32> -> vector<16x128xf32>
    %c0_11 = arith.constant 0 : index
    %c0_12 = arith.constant 0 : index
    %18 = vector.load %arg5[%c0_11, %c0_12] : memref<1x128xf32, #tpu.memory_space<vmem>>, vector<1x128xf32>
    %19 = vector.broadcast %18 : vector<1x128xf32> to vector<16x128xf32>
    %20 = arith.addf %17, %19 : vector<16x128xf32>
    %c0_13 = arith.constant 0 : index
    %c0_14 = arith.constant 0 : index
    %21 = vector.load %arg6[%c0_13, %c0_14] : memref<16x128xf32, #tpu.memory_space<vmem>>, vector<16x128xf32>
    tpu.vector_store %arg6[%c0_13, %c0_14], %20 {strides = array<i32>} : memref<16x128xf32, #tpu.memory_space<vmem>>, vector<16x128xf32>,
    return
  }
  func.func @transform_0(%arg0: i32) -> (i32, i32) {
    %c0_i32 = arith.constant 0 : i32
    %c0_i32_0 = arith.constant 0 : i32
    return %arg0, %c0_i32 : i32, i32
  }
  func.func @transform_1(%arg0: i32) -> (i32, i32) {
    %c0_i32 = arith.constant 0 : i32
    %c0_i32_0 = arith.constant 0 : i32
    %c0_i32_1 = arith.constant 0 : i32
    return %c0_i32, %c0_i32_0 : i32, i32
  }
  func.func @transform_2(%arg0: i32) -> (i32, i32) {
    %c0_i32 = arith.constant 0 : i32
    %c0_i32_0 = arith.constant 0 : i32
    %c0_i32_1 = arith.constant 0 : i32
    return %c0_i32, %c0_i32_0 : i32, i32
  }
  func.func @transform_3(%arg0: i32) -> (i32, i32) {
    %c0_i32 = arith.constant 0 : i32
    %c0_i32_0 = arith.constant 0 : i32
    %c0_i32_1 = arith.constant 0 : i32
    return %c0_i32, %c0_i32_0 : i32, i32
  }
  func.func @transform_4(%arg0: i32) -> (i32, i32) {
    %c0_i32 = arith.constant 0 : i32
    %c0_i32_0 = arith.constant 0 : i32
    %c0_i32_1 = arith.constant 0 : i32
    return %c0_i32, %c0_i32_0 : i32, i32
  }
  func.func @transform_5(%arg0: i32) -> (i32, i32) {
    %c0_i32 = arith.constant 0 : i32
    %c0_i32_0 = arith.constant 0 : i32
    return %arg0, %c0_i32 : i32, i32
  }
}

</mosaic_0001>

<bundles_post_ra>
// kernel: tpu_custom_call.1
= control target key start
LH: loop header
LB: loop body
LE: loop exit
PB: predicated region body
PF: predicated region fallthrough
CT: control target
= control target key end

     0   :  { %10 = vsyncpa [#allocation3], 0  ;;  %s699_s0 = inlined_call_operand.hbm [shape: f32[16,128], index: 0, kind: input, shape index: {}]   ;;  %s700_s1 = inlined_call_operand.hbm [shape: bf16[128,256], index: 1, kind: input, shape index: {}]   ;;  %s701_s2 = inlined_call_operand.vmem [shape: f32[1,256], index: 2, kind: input, shape index: {}]   ;;  %s702_s3 = inlined_call_operand.hbm [shape: bf16[256,128], index: 3, kind: input, shape index: {}]   ;;  %s703_s4 = inlined_call_operand.vmem [shape: f32[1,128], index: 4, kind: input, shape index: {}]   ;;  %s704_s5 = inlined_call_operand.hbm [shape: f32[16,128], index: 5, kind: output, shape index: {}]  }
   0x1   :  { %11 = vsyncpa [#allocation6], 0 }
   0x2   :  { %12 = vsyncpa [#allocation4], 0  ;;  %s633_s18 = smov [#allocation5]   ;;  %s634_s20 = smov [#allocation2]  }
   0x3   :  { %s30_s19 = sshll.u32 %s633_s18, 4  ;;  %s18_s21 = sshll.u32 %s634_s20, 4  ;;  %s31_s19 = int_to_ptr.vmem [resolvable:$true] %s30_s19  ;;  %s19_s21 = int_to_ptr.vmem [resolvable:$true] %s18_s21 }
   0x4   :  { %s555_s22 = scalar_lea.vmem %s31_s19, 2048  ;;  %p560_p1 = scmp.lt.s32.totalorder %s31_s19, %s31_s19 }
   0x5   :  { %p556_p0 = scmp.ne.s32.totalorder %s31_s19, %s555_s22  ;;  %p561_p2 = scmp.lt.s32.totalorder %s555_s22, %s555_s22 }
   0x7   :  { %p562_p3 = por %p561_p2, %p560_p1 }
   0x9   :  { %p563_p4 = pnand %p562_p3, %p556_p0 }
   0xb   :  { %566 = shalt.err (!%p563_p4)
}
   0xc   :  { %s635_s23 = smov 128   ;;  %s636_s24 = smov 8  }
   0xd   :  { %36 = dma.hbm_to_vmem [thread:$0]  %s700_s1, 2048, %s31_s19, [#allocation6], %s635_s23, %s635_s23, %s636_s24  }
   0xe   :  { %s575_s27 = scalar_lea.vmem %s19_s21, 256  ;;  %p580_p6 = scmp.lt.s32.totalorder %s19_s21, %s19_s21 }
   0xf   :  { %p576_p5 = scmp.ne.s32.totalorder %s19_s21, %s575_s27  ;;  %p581_p7 = scmp.lt.s32.totalorder %s575_s27, %s575_s27 }
  0x11   :  { %p582_p8 = por %p581_p7, %p580_p6 }
  0x13   :  { %p583_p9 = pnand %p582_p8, %p576_p5 }
  0x15   :  { %586 = shalt.err (!%p583_p9)
}
  0x16   :  { %24 = dma.hbm_to_vmem [thread:$0]  %s699_s0, 256, %s19_s21, [#allocation3], %s635_s23, %s635_s23, %s636_s24  }
  0x17   :  { %s637_s30 = smov [#allocation7]  }
  0x18   :  { %s44_s6 = sshll.u32 %s637_s30, 4  ;;  %s45_s6 = int_to_ptr.vmem [resolvable:$true] %s44_s6 }
  0x19   :  { %s595_s7 = scalar_lea.vmem %s45_s6, 2048  ;;  %p600_p11 = scmp.lt.s32.totalorder %s45_s6, %s45_s6 }
  0x1a   :  { %p596_p10 = scmp.ne.s32.totalorder %s45_s6, %s595_s7  ;;  %p601_p12 = scmp.lt.s32.totalorder %s595_s7, %s595_s7 }
  0x1c   :  { %p602_p13 = por %p601_p12, %p600_p11 }
  0x1e   :  { %p603_p0 = pnand %p602_p13, %p596_p10 }
  0x20   :  { %606 = shalt.err (!%p603_p0)
}
  0x21   :  { %s638_s1 = smov 64   ;;  %s639_s8 = smov 4  }
  0x22   :  { %50 = dma.hbm_to_vmem [thread:$0]  %s702_s3, 2048, %s45_s6, [#allocation6], %s638_s1, %s638_s1, %s639_s8  }
  0x23   :  { %627 = dma.done.wait [#allocation3], 256  }
  0x24   :  { %628 = vsyncadd [#allocation3], 4294967040 }
  0x25   :  { %629 = dma.done.wait [#allocation6], 4096  }
  0x26   :  { %630 = vsyncadd [#allocation6], 4294963200  ;;  %v640_v0 = vmov 0   ;;  %v499_v1 = vld [vmem:[#allocation5 + $0x74] ss:$8 sps:$4 sm:$0xff]   ;;  %v527_v24 = vld [vmem:[#allocation7 + $0x68] sm:$0xff]   ;;  %v84_v36 = vlaneseq }
  0x27   :  { %206 = vmatprep.mubr.bf16.mxu0 %v640_v0  ;;  %v501_v2 = vld [vmem:[#allocation5 + $0x70] ss:$8 sps:$4 sm:$0xff]   ;;  %174 = vmatprep.subr.bf16.mxu0 %v499_v1  ;;  %v502_v3 = vld [vmem:[#allocation5 + $0x64] ss:$8 sps:$4 sm:$0xff]   ;;  %v504_v4 = vld [vmem:[#allocation5 + $0x60] ss:$8 sps:$4 sm:$0xff]  }
  0x28   :  { %175 = vmatpush1.bf16.msra.mxu0 %v501_v2  ;;  %v505_v5 = vld [vmem:[#allocation5 + $0x54] ss:$8 sps:$4 sm:$0xff]   ;;  %v507_v6 = vld [vmem:[#allocation5 + $0x50] ss:$8 sps:$4 sm:$0xff]   ;;  %v508_v7 = vld [vmem:[#allocation5 + $0x44] ss:$8 sps:$4 sm:$0xff]  }
  0x29   :  { %176 = vmatprep.subr.bf16.mxu0 %v502_v3  ;;  %v510_v8 = vld [vmem:[#allocation5 + $0x40] ss:$8 sps:$4 sm:$0xff]   ;;  %v511_v9 = vld [vmem:[#allocation5 + $0x34] ss:$8 sps:$4 sm:$0xff]   ;;  %v513_v10 = vld [vmem:[#allocation5 + $0x30] ss:$8 sps:$4 sm:$0xff]  }
  0x2a   :  { %v514_v11 = vld [vmem:[#allocation5 + $0x24] ss:$8 sps:$4 sm:$0xff]   ;;  %v516_v12 = vld [vmem:[#allocation5 + $0x20] ss:$8 sps:$4 sm:$0xff]   ;;  %v517_v13 = vld [vmem:[#allocation5 + $0x14] ss:$8 sps:$4 sm:$0xff]  }
  0x2b   :  { %v519_v14 = vld [vmem:[#allocation5 + $0x10] ss:$8 sps:$4 sm:$0xff]   ;;  %v520_v15 = vld [vmem:[#allocation5 + $0x4] ss:$8 sps:$4 sm:$0xff]   ;;  %v522_v16 = vld [vmem:[#allocation5] ss:$8 sps:$4 sm:$0xff]  }
  0x2c   :  { %177 = vmatpush1.bf16.msra.mxu0 %v504_v4  ;;  %v63_v17 = vld [vmem:[#allocation2] sm:$0xff]  ;;  %v64_v18 = vld [vmem:[#allocation2 + $0x8] sm:$0xff]  ;;  %v528_v25 = vld [vmem:[#allocation7 + $0x28] sm:$0xff]   ;;  %v85_v37 = vshrl.u32 %v84_v36, 7  ;;  %s641_s12 = smov [#allocation8]  }
  0x2d   :  { %178 = vmatprep.subr.bf16.mxu0 %v505_v5  ;;  %v65_v19 = vpack.c.bf16 %v64_v18, %v63_v17  ;;  %v523_v20 = vld [vmem:[#allocation7 + $0x78] sm:$0xff]   ;;  %v525_v22 = vld [vmem:[#allocation7 + $0x70] sm:$0xff]   ;;  %v529_v26 = vld [vmem:[#allocation7 + $0x60] sm:$0xff]   ;;  %s422_s13 = sshll.u32 %s641_s12, 4  ;;  %s423_s13 = int_to_ptr.vmem [resolvable:$true] %s422_s13 }
  0x2e   :  { %v524_v21 = vld [vmem:[#allocation7 + $0x38] sm:$0xff]   ;;  %468 = vmatprep.subr.bf16.mxu1 %v523_v20  ;;  %v526_v23 = vld [vmem:[#allocation7 + $0x30] sm:$0xff]   ;;  %v530_v27 = vld [vmem:[#allocation7 + $0x20] sm:$0xff]   ;;  %v86_v38 = vsub.s32 0, %v85_v37  ;;  %v90_v40 = vsub.s32 1, %v85_v37  ;;  %s607_s14 = scalar_lea.vmem %s423_s13, 256  ;;  %p612_p2 = scmp.lt.s32.totalorder %s423_s13, %s423_s13 }
  0x2f   :  { %469 = vmatpush3.bf16.msra.mxu1 %v524_v21  ;;  %v531_v28 = vld [vmem:[#allocation7 + $0x58] sm:$0xff]   ;;  %v533_v30 = vld [vmem:[#allocation7 + $0x50] sm:$0xff]   ;;  %v535_v32 = vld [vmem:[#allocation7 + $0x48] sm:$0xff]   ;;  %p608_p1 = scmp.ne.s32.totalorder %s423_s13, %s607_s14  ;;  %p613_p3 = scmp.lt.s32.totalorder %s607_s14, %s607_s14 }
  0x30   :  { %179 = vmatpush1.bf16.msra.mxu0 %v507_v6  ;;  %470 = vmatprep.subr.bf16.mxu1 %v525_v22  ;;  %v532_v29 = vld [vmem:[#allocation7 + $0x18] sm:$0xff]   ;;  %v534_v31 = vld [vmem:[#allocation7 + $0x10] sm:$0xff]   ;;  %v536_v33 = vld [vmem:[#allocation7 + $0x8] sm:$0xff]  }
  0x31   :  { %180 = vmatprep.subr.bf16.mxu0 %v508_v7  ;;  %v537_v34 = vld [vmem:[#allocation7 + $0x40] sm:$0xff]   ;;  %v82_v39 = vld [vmem:[%s701_s2] sm:$0x3]  ;;  %p614_p4 = por %p613_p3, %p612_p2 }
  0x32   :  { %v538_v35 = vld [vmem:[#allocation7] sm:$0xff]   ;;  %v87_v41 = vrot.slane %v82_v39, %v86_v38  ;;  %v91_v42 = vrot.slane %v82_v39, %v90_v40 }
  0x33   :  { %471 = vmatpush3.bf16.msra.mxu1 %v526_v23  ;;  %p615_p5 = pnand %p614_p4, %p608_p1 }
  0x34   :  { %181 = vmatpush1.bf16.msra.mxu0 %v510_v8  ;;  %472 = vmatprep.subr.bf16.mxu1 %v527_v24 }
  0x35   :  { %182 = vmatprep.subr.bf16.mxu0 %v511_v9 }
  0x37   :  { %473 = vmatpush3.bf16.msra.mxu1 %v528_v25 }
  0x38   :  { %183 = vmatpush1.bf16.msra.mxu0 %v513_v10  ;;  %474 = vmatprep.subr.bf16.mxu1 %v529_v26  ;;  %v451_v10 = vld [vmem:[%s703_s4] ss:$0 sm:$0xff] }
  0x39   :  { %184 = vmatprep.subr.bf16.mxu0 %v514_v11 }
  0x3b   :  { %475 = vmatpush3.bf16.msra.mxu1 %v530_v27 }
  0x3c   :  { %185 = vmatpush1.bf16.msra.mxu0 %v516_v12  ;;  %476 = vmatprep.subr.bf16.mxu1 %v531_v28 }
  0x3d   :  { %186 = vmatprep.subr.bf16.mxu0 %v517_v13 }
  0x3f   :  { %477 = vmatpush3.bf16.msra.mxu1 %v532_v29 }
  0x40   :  { %187 = vmatpush1.bf16.msra.mxu0 %v519_v14  ;;  %478 = vmatprep.subr.bf16.mxu1 %v533_v30 }
  0x41   :  { %188 = vmatprep.subr.bf16.mxu0 %v520_v15 }
  0x43   :  { %479 = vmatpush3.bf16.msra.mxu1 %v534_v31 }
  0x44   :  { %189 = vmatpush1.bf16.msra.mxu0 %v522_v16  ;;  %480 = vmatprep.subr.bf16.mxu1 %v535_v32 }
  0x47   :  { %207 = vmatmul.mubr.bf16.vlgmr.msra.gmra.mxu0 %v65_v19  ;;  %481 = vmatpush3.bf16.msra.mxu1 %v536_v33 }
  0x48   :  { %482 = vmatprep.subr.bf16.mxu1 %v537_v34 }
  0x4b   :  { %483 = vmatpush3.bf16.msra.mxu1 %v538_v35 }
 0x107   :  { %v208_v43 = vpop.f32.mrf.mxu0 }
 0x108   :  { %v209_v44 = vadd.f32 %v208_v43, %v87_v41 }
 0x109   :  { %v210_v45 = vpop.f32.mrf.mxu0 }
 0x10a   :  { %v211_v46 = vadd.f32 %v210_v45, %v91_v42  ;;  %v221_v47 = vmul.f32 0.70710677, %v209_v44  ;;  %v217_v2 = vmul.f32 0.5, %v209_v44 }
 0x10b   :  { %v212_v48 = vpop.f32.mrf.mxu0 }
 0x10c   :  { %v222_v49 = vmul.f32 0.70710677, %v211_v46  ;;  %v213_v50 = vadd.f32 %v212_v48, %v87_v41  ;;  %v218_v63 = vmul.f32 0.5, %v211_v46 }
 0x10d   :  { %v214_v51 = vpop.f32.mrf.mxu0 }
 0x10e   :  { %539 = verf.f32 %v222_v49  ;;  %v223_v52 = vmul.f32 0.70710677, %v213_v50  ;;  %v215_v53 = vadd.f32 %v214_v51, %v91_v42  ;;  %v219_v62 = vmul.f32 0.5, %v213_v50 }
 0x10f   :  { %541 = verf.f32 %v221_v47 }
 0x110   :  { %543 = verf.f32 %v223_v52  ;;  %v224_v54 = vmul.f32 0.70710677, %v215_v53  ;;  %v220_v0 = vmul.f32 0.5, %v215_v53 }
 0x112   :  { %545 = verf.f32 %v224_v54 }
 0x11b   :  { %v540_v55 = vpop.eup %539 }
 0x11c   :  { %v542_v56 = vpop.eup %541  ;;  %v230_v59 = vadd.f32 1.0, %v540_v55 }
 0x11d   :  { %v544_v57 = vpop.eup %543  ;;  %v229_v61 = vadd.f32 1.0, %v542_v56 }
 0x11e   :  { %v231_v58 = vadd.f32 1.0, %v544_v57  ;;  %v234_v4 = vmul.f32 %v230_v59, %v218_v63 }
 0x11f   :  { %v546_v60 = vpop.eup %545  ;;  %v233_v6 = vmul.f32 %v229_v61, %v217_v2 }
 0x120   :  { %v232_v1 = vadd.f32 1.0, %v546_v60  ;;  %v235_v3 = vmul.f32 %v231_v58, %v219_v62 }
 0x122   :  { %v236_v5 = vmul.f32 %v232_v1, %v220_v0  ;;  %v237_v8 = vpack.c.bf16 %v235_v3, %v233_v6 }
 0x124   :  { %v238_v7 = vpack.c.bf16 %v236_v5, %v234_v4 }
 0x126   :  { %406 = vmatprep.mubr.bf16.mxu1 %v238_v7 }
 0x127   :  { %407 = vmatmul.mubr.bf16.vlgmr.msra.gmra.mxu1 %v237_v8 }
 0x1e7   :  { %v484_v9 = vpop.f32.mrf.mxu1 }
 0x1e9   :  { %v485_v11 = vpop.f32.mrf.mxu1 }
 0x1ea   :  { %v486_v12 = vadd.f32 %v485_v11, %v484_v9 }
 0x1eb   :  { %v487_v13 = vpop.f32.mrf.mxu1 }
 0x1ec   :  { %v409_v14 = vadd.f32 %v486_v12, %v451_v10 }
 0x1ed   :  { %v488_v15 = vpop.f32.mrf.mxu1 }
 0x1ee   :  { %415 = vst [vmem:[#allocation8] sm:$0xff] %v409_v14  ;;  %v489_v16 = vadd.f32 %v488_v15, %v487_v13 }
 0x1f0   :  { %v412_v17 = vadd.f32 %v489_v16, %v451_v10 }
 0x1f2   :  { %416 = vst [vmem:[#allocation8 + $0x8] sm:$0xff] %v412_v17 }
 0x1f3   :  { %618 = shalt.err (!%p615_p5)
}
 0x1f4   :  { %428 = dma.vmem_to_hbm [thread:$0]  %s423_s13, 256, %s704_s5, [#allocation4], %s635_s23, %s635_s23, %s636_s24  }
 0x1f5   :  { %631 = dma.done.wait [#allocation4], 256  }
 0x1f6   :  { %632 = vsyncadd [#allocation4], 4294967040 }
 0x1f7   :  { %432 = vsyncpa [#allocation3], 1 }
 0x1f8   :  { %433 = vsyncpa [#allocation6], 1 }
 0x1f9   :  { %434 = vsyncpa [#allocation4], 1 }

</bundles_post_ra>
